<compile_context>
chip_gen: v7x
topology: tpu7x:2x2x1
jax: 0.10.0
libtpu: 0.0.40
codegen_flags: <defaults>
</compile_context>

<pallas_src>
import functools

import jax
import jax.numpy as jnp
from jax.experimental import pallas as pl
from jax.experimental.pallas import tpu as pltpu

HIDDEN = 128


def _round_up(x, m):
    return (x + m - 1) // m * m


def critic_kernel(x_ref, w1_ref, b1_ref, w2_ref, b2_ref, w3_ref, b3_ref, o_ref):
    # Layer 1: Linear (bf16 MXU, f32 accumulate) + bias + ReLU
    h1 = jnp.dot(x_ref[...], w1_ref[...], preferred_element_type=jnp.float32)
    h1 = jnp.maximum(h1 + b1_ref[...], 0.0)
    # Layer 2: Linear + ReLU
    h2 = jnp.dot(h1.astype(jnp.bfloat16), w2_ref[...],
                 preferred_element_type=jnp.float32)
    h2 = jnp.maximum(h2 + b2_ref[...], 0.0)
    # Layer 3 (value head, 128 -> 1): VPU multiply + cross-lane reduction.
    # Avoids the padded MXU pass and the 128x-redundant output writeback.
    v = jnp.sum(h2 * w3_ref[...], axis=-1, keepdims=True) + b3_ref[...]
    o_ref[...] = v


def prepare_params(params):
    """One-time conversion into kernel-ready layout (hoisted out of the hot path).

    params: (w1, b1, w2, b2, w3, b3) with weights stored [in, out]
    (transposed relative to PyTorch's [out, in]).
    """
    w1, b1, w2, b2, w3, b3 = params
    return (
        w1.astype(jnp.bfloat16),                       # [in_dim, 128]
        b1.reshape(1, HIDDEN).astype(jnp.float32),     # [1, 128]
        w2.astype(jnp.bfloat16),                       # [128, 128]
        b2.reshape(1, HIDDEN).astype(jnp.float32),     # [1, 128]
        w3.reshape(1, HIDDEN).astype(jnp.float32),     # value-head row, VPU path
        b3.reshape(1, 1).astype(jnp.float32),          # [1, 1]
    )


@functools.partial(jax.jit, static_argnames=("tb",))
def critic_forward(state, prepared, tb=512):
    """state: [B, in_dim] float.  Returns value: [B, 1] float32."""
    w1, b1, w2, b2, w3_row, b3 = prepared
    B, in_dim = state.shape

    # Batch tile: multiple of 16 (bf16 sublane packing), capped at `tb` rows
    # to amortize per-grid-step overhead while staying far under VMEM limits.
    TB = min(tb, _round_up(B, 16))
    B_pad = _round_up(B, TB)

    x = state.astype(jnp.bfloat16)
    if B_pad != B:
        x = jnp.pad(x, ((0, B_pad - B), (0, 0)))

    out = pl.pallas_call(
        critic_kernel,
        out_shape=jax.ShapeDtypeStruct((B_pad, 1), jnp.float32),
        grid_spec=pltpu.PrefetchScalarGridSpec(
            num_scalar_prefetch=0,
            grid=(B_pad // TB,),
            in_specs=[
                pl.BlockSpec((TB, in_dim), lambda i: (i, 0)),      # x tile
                pl.BlockSpec((in_dim, HIDDEN), lambda i: (0, 0)),  # w1 (resident)
                pl.BlockSpec((1, HIDDEN), lambda i: (0, 0)),       # b1
                pl.BlockSpec((HIDDEN, HIDDEN), lambda i: (0, 0)),  # w2 (resident)
                pl.BlockSpec((1, HIDDEN), lambda i: (0, 0)),       # b2
                pl.BlockSpec((1, HIDDEN), lambda i: (0, 0)),       # w3 row
                pl.BlockSpec((1, 1), lambda i: (0, 0)),            # b3
            ],
            out_specs=pl.BlockSpec((TB, 1), lambda i: (i, 0)),
        ),
        compiler_params=pltpu.CompilerParams(
            # Batch axis is independent -> megacore shard on v7x, neutral on v5e/v6e.
            dimension_semantics=("parallel",),
        ),
    )(x, w1, b1, w2, b2, w3_row, b3)

    return out[:B] if B_pad != B else out


def init_params(key, in_dim):
    """Deterministic init mimicking PyTorch Linear default (U[-1/sqrt(fan_in), +])."""
    ks = jax.random.split(key, 6)

    def lin(kw, kb, fan_in, fan_out):
        bound = 1.0 / jnp.sqrt(fan_in)
        w = jax.random.uniform(kw, (fan_in, fan_out), jnp.float32, -bound, bound)
        b = jax.random.uniform(kb, (fan_out,), jnp.float32, -bound, bound)
        return w, b

    w1, b1 = lin(ks[0], ks[1], in_dim, HIDDEN)
    w2, b2 = lin(ks[2], ks[3], HIDDEN, HIDDEN)
    w3, b3 = lin(ks[4], ks[5], HIDDEN, 1)
    return (w1, b1, w2, b2, w3, b3)


def critic_reference_f32(state, params):
    w1, b1, w2, b2, w3, b3 = params
    h1 = jnp.maximum(state @ w1 + b1, 0.0)
    h2 = jnp.maximum(h1 @ w2 + b2, 0.0)
    return h2 @ w3 + b3


def critic_reference_bf16(state, params):
    # Mirrors the kernel's bf16-input / f32-accumulate arithmetic.
    w1, b1, w2, b2, w3, b3 = params
    x = state.astype(jnp.bfloat16)
    h1 = jnp.dot(x, w1.astype(jnp.bfloat16), preferred_element_type=jnp.float32)
    h1 = jnp.maximum(h1 + b1, 0.0)
    h2 = jnp.dot(h1.astype(jnp.bfloat16), w2.astype(jnp.bfloat16),
                 preferred_element_type=jnp.float32)
    h2 = jnp.maximum(h2 + b2, 0.0)
    return jnp.sum(h2 * w3.reshape(1, HIDDEN), axis=-1, keepdims=True) + b3.reshape(1, 1)


if __name__ == "__main__":
    key = jax.random.PRNGKey(0)
    k_params, k_state = jax.random.split(key)

    B, in_dim = 8, 32
    params = init_params(k_params, in_dim)
    prepared = prepare_params(params)        # hoisted out of the per-call path
    state = jax.random.normal(k_state, (B, in_dim), jnp.float32)

    value = critic_forward(state, prepared)
    value = jax.block_until_ready(value)
    assert value.shape == (B, 1)

    # Tight check against a bf16-matched reference, loose check against pure f32.
    ref_bf16 = critic_reference_bf16(state, params)
    ref_f32 = critic_reference_f32(state, params)
    assert jnp.allclose(value, ref_bf16, atol=1e-2, rtol=1e-2)
    assert jnp.allclose(value, ref_f32, atol=5e-2, rtol=5e-2)

    print("KERNEL_OK")
</pallas_src>

<mosaic_0001>
module attributes {stable_mosaic.version = 11 : i64} {
  func.func @critic_kernel(%arg0: i32, %arg1: memref<16x32xbf16, #tpu.memory_space<vmem>>, %arg2: memref<32x128xbf16, #tpu.memory_space<vmem>>, %arg3: memref<1x128xf32, #tpu.memory_space<vmem>>, %arg4: memref<128x128xbf16, #tpu.memory_space<vmem>>, %arg5: memref<1x128xf32, #tpu.memory_space<vmem>>, %arg6: memref<1x128xf32, #tpu.memory_space<vmem>>, %arg7: memref<1x1xf32, #tpu.memory_space<vmem>>, %arg8: memref<16x1xf32, #tpu.memory_space<vmem>>) attributes {dimension_semantics = [#tpu.dimension_semantics<parallel>], iteration_bounds = array<i64: 1>, scalar_prefetch = 0 : i64, scratch_operands = 0 : i64, tpu.core_type = #tpu.core_type<tc>, window_params = [{transform_indices = @transform_0, window_bounds = array<i64: 16, 32>}, {pipeline_mode = #tpu.pipeline_mode<synchronous>, transform_indices = @transform_1, window_bounds = array<i64: 32, 128>}, {pipeline_mode = #tpu.pipeline_mode<synchronous>, transform_indices = @transform_2, window_bounds = array<i64: 1, 128>}, {pipeline_mode = #tpu.pipeline_mode<synchronous>, transform_indices = @transform_3, window_bounds = array<i64: 128, 128>}, {pipeline_mode = #tpu.pipeline_mode<synchronous>, transform_indices = @transform_4, window_bounds = array<i64: 1, 128>}, {pipeline_mode = #tpu.pipeline_mode<synchronous>, transform_indices = @transform_5, window_bounds = array<i64: 1, 128>}, {pipeline_mode = #tpu.pipeline_mode<synchronous>, transform_indices = @transform_6, window_bounds = array<i64: 1, 1>}, {transform_indices = @transform_7, window_bounds = array<i64: 16, 1>}]} {
    %c0 = arith.constant 0 : index
    %c0_0 = arith.constant 0 : index
    %0 = vector.load %arg1[%c0, %c0_0] : memref<16x32xbf16, #tpu.memory_space<vmem>>, vector<16x32xbf16>
    %c0_1 = arith.constant 0 : index
    %c0_2 = arith.constant 0 : index
    %1 = vector.load %arg2[%c0_1, %c0_2] : memref<32x128xbf16, #tpu.memory_space<vmem>>, vector<32x128xbf16>
    %cst = arith.constant dense<0.000000e+00> : vector<16x128xf32>
    %2 = tpu.matmul %0, %1, %cst {dimension_numbers = #tpu.dot_dimension_numbers<[1], [0], [0], [1], [0, 0, 1, 1], [], []>} : vector<16x32xbf16>, vector<32x128xbf16>, vector<16x128xf32> -> vector<16x128xf32>
    %c0_3 = arith.constant 0 : index
    %c0_4 = arith.constant 0 : index
    %3 = vector.load %arg3[%c0_3, %c0_4] : memref<1x128xf32, #tpu.memory_space<vmem>>, vector<1x128xf32>
    %4 = vector.broadcast %3 : vector<1x128xf32> to vector<16x128xf32>
    %5 = arith.addf %2, %4 : vector<16x128xf32>
    %cst_5 = arith.constant 0.000000e+00 : f32
    %6 = vector.broadcast %cst_5 : f32 to vector<16x128xf32>
    %7 = arith.maximumf %5, %6 : vector<16x128xf32>
    %8 = arith.truncf %7 : vector<16x128xf32> to vector<16x128xbf16>
    %c0_6 = arith.constant 0 : index
    %c0_7 = arith.constant 0 : index
    %9 = vector.load %arg4[%c0_6, %c0_7] : memref<128x128xbf16, #tpu.memory_space<vmem>>, vector<128x128xbf16>
    %cst_8 = arith.constant dense<0.000000e+00> : vector<16x128xf32>
    %10 = tpu.matmul %8, %9, %cst_8 {dimension_numbers = #tpu.dot_dimension_numbers<[1], [0], [0], [1], [0, 0, 1, 1], [], []>} : vector<16x128xbf16>, vector<128x128xbf16>, vector<16x128xf32> -> vector<16x128xf32>
    %c0_9 = arith.constant 0 : index
    %c0_10 = arith.constant 0 : index
    %11 = vector.load %arg5[%c0_9, %c0_10] : memref<1x128xf32, #tpu.memory_space<vmem>>, vector<1x128xf32>
    %12 = vector.broadcast %11 : vector<1x128xf32> to vector<16x128xf32>
    %13 = arith.addf %10, %12 : vector<16x128xf32>
    %cst_11 = arith.constant 0.000000e+00 : f32
    %14 = vector.broadcast %cst_11 : f32 to vector<16x128xf32>
    %15 = arith.maximumf %13, %14 : vector<16x128xf32>
    %c0_12 = arith.constant 0 : index
    %c0_13 = arith.constant 0 : index
    %16 = vector.load %arg6[%c0_12, %c0_13] : memref<1x128xf32, #tpu.memory_space<vmem>>, vector<1x128xf32>
    %17 = vector.broadcast %16 : vector<1x128xf32> to vector<16x128xf32>
    %18 = arith.mulf %15, %17 : vector<16x128xf32>
    %cst_14 = arith.constant dense<0.000000e+00> : vector<16xf32>
    %19 = vector.multi_reduction <add>, %18, %cst_14 [1] : vector<16x128xf32> to vector<16xf32>
    %20 = vector.shape_cast %19 : vector<16xf32> to vector<16x1xf32>
    %c0_15 = arith.constant 0 : index
    %c0_16 = arith.constant 0 : index
    %21 = vector.load %arg7[%c0_15, %c0_16] : memref<1x1xf32, #tpu.memory_space<vmem>>, vector<1x1xf32>
    %22 = vector.broadcast %21 : vector<1x1xf32> to vector<16x1xf32>
    %23 = arith.addf %20, %22 : vector<16x1xf32>
    %c0_17 = arith.constant 0 : index
    %c0_18 = arith.constant 0 : index
    %24 = vector.load %arg8[%c0_17, %c0_18] : memref<16x1xf32, #tpu.memory_space<vmem>>, vector<16x1xf32>
    tpu.vector_store %arg8[%c0_17, %c0_18], %23 {strides = array<i32>} : memref<16x1xf32, #tpu.memory_space<vmem>>, vector<16x1xf32>,
    return
  }
  func.func @transform_0(%arg0: i32) -> (i32, i32) {
    %c0_i32 = arith.constant 0 : i32
    %c0_i32_0 = arith.constant 0 : i32
    return %arg0, %c0_i32 : i32, i32
  }
  func.func @transform_1(%arg0: i32) -> (i32, i32) {
    %c0_i32 = arith.constant 0 : i32
    %c0_i32_0 = arith.constant 0 : i32
    %c0_i32_1 = arith.constant 0 : i32
    return %c0_i32, %c0_i32_0 : i32, i32
  }
  func.func @transform_2(%arg0: i32) -> (i32, i32) {
    %c0_i32 = arith.constant 0 : i32
    %c0_i32_0 = arith.constant 0 : i32
    %c0_i32_1 = arith.constant 0 : i32
    return %c0_i32, %c0_i32_0 : i32, i32
  }
  func.func @transform_3(%arg0: i32) -> (i32, i32) {
    %c0_i32 = arith.constant 0 : i32
    %c0_i32_0 = arith.constant 0 : i32
    %c0_i32_1 = arith.constant 0 : i32
    return %c0_i32, %c0_i32_0 : i32, i32
  }
  func.func @transform_4(%arg0: i32) -> (i32, i32) {
    %c0_i32 = arith.constant 0 : i32
    %c0_i32_0 = arith.constant 0 : i32
    %c0_i32_1 = arith.constant 0 : i32
    return %c0_i32, %c0_i32_0 : i32, i32
  }
  func.func @transform_5(%arg0: i32) -> (i32, i32) {
    %c0_i32 = arith.constant 0 : i32
    %c0_i32_0 = arith.constant 0 : i32
    %c0_i32_1 = arith.constant 0 : i32
    return %c0_i32, %c0_i32_0 : i32, i32
  }
  func.func @transform_6(%arg0: i32) -> (i32, i32) {
    %c0_i32 = arith.constant 0 : i32
    %c0_i32_0 = arith.constant 0 : i32
    %c0_i32_1 = arith.constant 0 : i32
    return %c0_i32, %c0_i32_0 : i32, i32
  }
  func.func @transform_7(%arg0: i32) -> (i32, i32) {
    %c0_i32 = arith.constant 0 : i32
    %c0_i32_0 = arith.constant 0 : i32
    return %arg0, %c0_i32 : i32, i32
  }
}

</mosaic_0001>

<bundles_post_ra>
// kernel: critic_forward.1
= control target key start
LH: loop header
LB: loop body
LE: loop exit
PB: predicated region body
PF: predicated region fallthrough
CT: control target
= control target key end

     0   :  { %s445_s0 = inlined_call_operand.vmem [shape: bf16[16,32], index: 0, kind: input, shape index: {}]   ;;  %s446_s1 = inlined_call_operand.vmem [shape: bf16[32,128], index: 1, kind: input, shape index: {}]   ;;  %s447_s2 = inlined_call_operand.vmem [shape: f32[1,128], index: 2, kind: input, shape index: {}]   ;;  %s448_s3 = inlined_call_operand.hbm [shape: bf16[128,128], index: 3, kind: input, shape index: {}]   ;;  %s449_s4 = inlined_call_operand.vmem [shape: f32[1,128], index: 4, kind: input, shape index: {}]   ;;  %s450_s5 = inlined_call_operand.vmem [shape: f32[1,128], index: 5, kind: input, shape index: {}]   ;;  %s451_s6 = inlined_call_operand.<no memory space> [shape: f32[1,1], index: 6, kind: input, shape index: {}]   ;;  %s452_s7 = inlined_call_operand.vmem [shape: f32[16,1], index: 7, kind: output, shape index: {}]  }
   0x1   :  { %v12_v0 = vstv %s451_s6 }
   0x2   :  { %13 = vst [vmem:[#allocation2] sm:$0x1] %v12_v0 }
   0x3   :  { %14 = vsyncpa [#allocation4], 0  ;;  %s361_s26 = smov [#allocation3]   ;;  %s337_s30 = scalar_lea.hbm %s448_s3, 1024 }
   0x4   :  { %s26_s27 = sshll.u32 %s361_s26, 4  ;;  %p338_p0 = scmp.ne.s32.totalorder %s448_s3, %s337_s30  ;;  %s27_s27 = int_to_ptr.vmem [resolvable:$true] %s26_s27 }
   0x5   :  { %p341_p1 = scmp.lt.u32.totalorder %s337_s30, %s448_s3 }
   0x7   :  { %p343_p2 = pnand %p341_p1, %p338_p0 }
   0x9   :  { %346 = shalt.err (!%p343_p2)
}
   0xa   :  { %s347_s6 = scalar_lea.vmem %s27_s27, 1024  ;;  %p352_p4 = scmp.lt.s32.totalorder %s27_s27, %s27_s27 }
   0xb   :  { %p348_p3 = scmp.ne.s32.totalorder %s27_s27, %s347_s6  ;;  %p353_p5 = scmp.lt.s32.totalorder %s347_s6, %s347_s6 }
   0xd   :  { %p354_p6 = por %p353_p5, %p352_p4 }
   0xf   :  { %p355_p7 = pnand %p354_p6, %p348_p3 }
  0x11   :  { %358 = shalt.err (!%p355_p7)
}
  0x12   :  { %s362_s12 = smov 64   ;;  %s363_s13 = smov 4  }
  0x13   :  { %32 = dma.hbm_to_vmem [thread:$0]  %s448_s3, 1024, %s27_s27, [#allocation4], %s362_s12, %s362_s12, %s363_s13  }
  0x14   :  { %359 = dma.done.wait [#allocation4], 1024  }
  0x15   :  { %360 = vsyncadd [#allocation4], 4294966272  ;;  %v364_v1 = vmov 0.0   ;;  %vm365_vm0 = vmmov 0   ;;  %v326_v2 = vld [vmem:[%s446_s1] sm:$0xff]   ;;  %v327_v3 = vld [vmem:[%s446_s1 + $0x8] sm:$0xff]  }
  0x16   :  { %293 = vmatprep.subr.bf16.mxu0 %v364_v1  ;;  %297 = vmatprep.mubr.msk.bf16.mxu0 %vm365_vm0, %v364_v1  ;;  %v329_v4 = vld [vmem:[#allocation3] sm:$0xff]   ;;  %v330_v6 = vld [vmem:[#allocation3 + $0x8] sm:$0xff]   ;;  %vm73_vm1 = vcmask 261120   ;;  %v331_v7 = vld [vmem:[#allocation3 + $0x10] sm:$0xff]   ;;  %vm257_vm2 = vcmask 7168  }
  0x17   :  { %301 = vmatprep.subr.bf16.mxu1 %v364_v1  ;;  %317 = vmatprep.mubr.msk.bf16.mxu1 %vm365_vm0, %v364_v1  ;;  %v328_v5 = vld [vmem:[%s445_s0] sm:$0xff]   ;;  %v334_v10 = vld [vmem:[#allocation3 + $0x28] sm:$0xff]   ;;  %v335_v11 = vld [vmem:[#allocation3 + $0x30] sm:$0xff]  }
  0x18   :  { %294 = vmatpush3.bf16.msra.mxu0 %v326_v2  ;;  %302 = vmatpush3.bf16.msra.mxu1 %v329_v4  ;;  %v332_v8 = vld [vmem:[#allocation3 + $0x18] sm:$0xff]   ;;  %v333_v9 = vld [vmem:[#allocation3 + $0x20] sm:$0xff]  }
  0x19   :  { %295 = vmatprep.subr.bf16.mxu0 %v364_v1  ;;  %303 = vmatprep.subr.bf16.mxu1 %v364_v1  ;;  %v336_v12 = vld [vmem:[#allocation3 + $0x38] sm:$0xff]  }
  0x1a   :  { %v265_v13 = vld [vmem:[%s447_s2] ss:$0 sm:$0xff] }
  0x1b   :  { %v270_v23 = vld [vmem:[%s449_s4] ss:$0 sm:$0xff] }
  0x1c   :  { %296 = vmatpush3.bf16.msra.mxu0 %v327_v3  ;;  %304 = vmatpush3.bf16.msra.mxu1 %v330_v6  ;;  %v279_v28 = vld [vmem:[%s450_s5] ss:$0 sm:$0xff] }
  0x1d   :  { %305 = vmatprep.subr.bf16.mxu1 %v364_v1  ;;  %v280_v35 = vld [vmem:[#allocation2] ss:$0 sm:$0xff] }
  0x1f   :  { %298 = vmatmul.mubr.msk.bf16.vlgmr.msra.gmra.mrb[0].mxu0 %vm73_vm1, %v328_v5 }
  0x20   :  { %306 = vmatpush3.bf16.msra.mxu1 %v331_v7 }
  0x21   :  { %307 = vmatprep.subr.bf16.mxu1 %v364_v1 }
  0x24   :  { %308 = vmatpush3.bf16.msra.mxu1 %v332_v8 }
  0x25   :  { %309 = vmatprep.subr.bf16.mxu1 %v364_v1 }
  0x28   :  { %310 = vmatpush3.bf16.msra.mxu1 %v333_v9 }
  0x29   :  { %311 = vmatprep.subr.bf16.mxu1 %v364_v1 }
  0x2c   :  { %312 = vmatpush3.bf16.msra.mxu1 %v334_v10 }
  0x2d   :  { %313 = vmatprep.subr.bf16.mxu1 %v364_v1 }
  0x30   :  { %314 = vmatpush3.bf16.msra.mxu1 %v335_v11 }
  0x31   :  { %315 = vmatprep.subr.bf16.mxu1 %v364_v1 }
  0x34   :  { %316 = vmatpush3.bf16.msra.mxu1 %v336_v12 }
  0xf2   :  { %v111_v14 = vpop.f32.mrb[0].mxu0 }
  0xf3   :  { %v112_v15 = vadd.f32 %v265_v13, %v111_v14  ;;  %v299_v16 = vpop.f32.mrb[1].mxu0 }
  0xf4   :  { %v114_v17 = vpop.f32.mrb[2].mxu0 }
  0xf5   :  { %v115_v18 = vadd.f32 %v265_v13, %v114_v17  ;;  %v300_v19 = vpop.f32.mrb[3].mxu0  ;;  %v118_v20 = vmax.f32 %v112_v15, 0.0 }
  0xf7   :  { %v119_v21 = vmax.f32 %v115_v18, 0.0 }
  0xf9   :  { %v120_v22 = vpack.c.bf16 %v119_v21, %v118_v20 }
  0xfb   :  { %318 = vmatmul.mubr.bf16.vlgmr.msra.gmra.mrb[0].mxu1 %v120_v22 }
 0x1ce   :  { %v226_v24 = vpop.f32.mrb[0].mxu1 }
 0x1cf   :  { %v227_v25 = vadd.f32 %v270_v23, %v226_v24  ;;  %v319_v26 = vpop.f32.mrb[1].mxu1 }
 0x1d0   :  { %v229_v27 = vpop.f32.mrb[2].mxu1 }
 0x1d1   :  { %v233_v29 = vmax.f32 %v227_v25, 0.0  ;;  %v230_v30 = vadd.f32 %v270_v23, %v229_v27  ;;  %v320_v31 = vpop.f32.mrb[3].mxu1 }
 0x1d3   :  { %v234_v32 = vmax.f32 %v230_v30, 0.0  ;;  %v242_v33 = vmul.f32 %v279_v28, %v233_v29 }
 0x1d5   :  { %244 = vadd.xlane.f32.xlu0 %v242_v33  ;;  %v243_v34 = vmul.f32 %v279_v28, %v234_v32 }
 0x1d9   :  { %246 = vadd.xlane.f32.xlu0 %v243_v34 }
 0x262   :  { %v245_v36 = vpop.xlane.xlu0 %244 }
 0x263   :  { %v255_v37 = vadd.f32 %v280_v35, %v245_v36 }
 0x265   :  { %258 = vst.msk [vmem:[%s452_s7] sm:$0xff] %vm257_vm2, %v255_v37 }
 0x266   :  { %v247_v38 = vpop.xlane.xlu0 %246 }
 0x267   :  { %v256_v39 = vadd.f32 %v280_v35, %v247_v38 }
 0x269   :  { %259 = vst.msk [vmem:[%s452_s7 + $0x8] sm:$0xff] %vm257_vm2, %v256_v39 }
 0x26a   :  { %264 = vsyncpa [#allocation4], 1 }

</bundles_post_ra>
